<compile_context>
chip_gen: v6e
topology: v6e:2x2x1
jax: 0.10.0
libtpu: 0.0.40
codegen_flags: <defaults>
</compile_context>

<pallas_src>
import jax
import jax.numpy as jnp
from jax.experimental import pallas as pl
from jax.experimental.pallas import tpu as pltpu


def _make_hierarchy_loss_kernel(hier_weight, n_logit_elems, batch, row_tile):
    hw = float(hier_weight)
    inv_n = 1.0 / float(n_logit_elems)           # BCEWithLogitsLoss 'mean' divisor
    needs_mask = (batch % row_tile) != 0         # static: only mask when padded

    def kernel(logits_ref, labels_ref, diff_ref, out_ref, acc_ref):
        i = pl.program_id(0)

        @pl.when(i == 0)
        def _init():
            acc_ref[...] = jnp.zeros_like(acc_ref)

        x = logits_ref[...]
        y = labels_ref[...]
        # bf16 transport is allowed; compute/accumulate in f32 (v5e has no
        # bf16 VPU/EUP datapath anyway).  No-op when inputs are already f32.
        if x.dtype != jnp.float32:
            x = x.astype(jnp.float32)
        if y.dtype != jnp.float32:
            y = y.astype(jnp.float32)

        # Numerically stable BCE-with-logits per element:
        #   l = max(x, 0) - x*y + log1p(exp(-|x|))
        bce = jnp.maximum(x, 0.0) - x * y + jnp.log1p(jnp.exp(-jnp.abs(x)))

        if needs_mask:
            # Zero contributions from padded rows of the final partial tile.
            rows = jax.lax.broadcasted_iota(jnp.int32, bce.shape, 0) + i * row_tile
            bce = jnp.where(rows < batch, bce, 0.0)

        acc_ref[...] += jnp.sum(bce, keepdims=True)

        @pl.when(i == pl.num_programs(0) - 1)
        def _finalize():
            d = diff_ref[...]
            if d.dtype != jnp.float32:
                d = d.astype(jnp.float32)
            recursive_loss = jnp.sum(d * d, keepdims=True)        # (1, 1)
            # Single write of the scalar output block, at the last step only.
            out_ref[...] = acc_ref[...] * inv_n + hw * recursive_loss

    return kernel


def _choose_row_tile(batch, num_labels, itemsize):
    # Target ~2 MiB per (TB, L) input block: big enough to amortize the
    # ~0.35 us/step grid overhead, small enough that 2 inputs x 2
    # double-buffers fit comfortably under the explicit 32 MiB VMEM limit on
    # every TPU generation (v5e scoped default 16 MiB, v7x 64 MiB physical).
    target_block_bytes = 2 * 1024 * 1024
    rows = max(1, target_block_bytes // max(1, num_labels * itemsize))
    if rows >= batch:
        return batch                       # one tile covering all rows (full-dim block)
    rows = max(8, (rows // 8) * 8)         # partial tiles must be sublane (8) aligned
    return min(rows, batch)


def hierarchy_loss(logits, labels, label_emb, hier_relation, hier_weight,
                   row_tile=None):
    """Pallas TPU implementation of HierarchyLoss.forward (loss_fn = BCEWithLogits, mean)."""
    # ---- host-side glue: flatten the parent->children dict into id pairs ----
    parent_ids, child_ids = [], []
    for p_idx in sorted(hier_relation.keys()):
        for c in hier_relation[p_idx]:
            parent_ids.append(p_idx)
            child_ids.append(c)

    emb_dim = label_emb.shape[1]
    if parent_ids:
        pid = jnp.asarray(parent_ids, dtype=jnp.int32)
        cid = jnp.asarray(child_ids, dtype=jnp.int32)
        # Single (P, D) difference tensor: half the regularizer HBM traffic of
        # materializing parent_emb and child_emb separately.
        diff = jnp.take(label_emb, pid, axis=0) - jnp.take(label_emb, cid, axis=0)
    else:
        # Empty taxonomy: contributes exactly zero (0-sized blocks don't lower).
        diff = jnp.zeros((1, emb_dim), dtype=label_emb.dtype)

    batch, num_labels = logits.shape
    if row_tile is None:
        row_tile = _choose_row_tile(batch, num_labels, logits.dtype.itemsize)
    assert row_tile == batch or (row_tile % 8 == 0), row_tile
    grid = (pl.cdiv(batch, row_tile),)

    kernel = _make_hierarchy_loss_kernel(hier_weight, batch * num_labels,
                                         batch, row_tile)

    p, d = diff.shape
    cost = pl.CostEstimate(
        flops=int(6 * batch * num_labels + 2 * p * d),
        transcendentals=int(2 * batch * num_labels),
        bytes_accessed=int(batch * num_labels *
                           (logits.dtype.itemsize + labels.dtype.itemsize)
                           + p * d * diff.dtype.itemsize + 4),
    )

    out = pl.pallas_call(
        kernel,
        out_shape=jax.ShapeDtypeStruct((1, 1), jnp.float32),
        grid_spec=pltpu.PrefetchScalarGridSpec(
            num_scalar_prefetch=0,
            grid=grid,
            in_specs=[
                pl.BlockSpec((row_tile, num_labels), lambda i: (i, 0)),
                pl.BlockSpec((row_tile, num_labels), lambda i: (i, 0)),
                # Constant block index -> DMA'd once, stays resident in VMEM.
                pl.BlockSpec((p, d), lambda i: (0, 0)),
            ],
            out_specs=pl.BlockSpec((1, 1), lambda i: (0, 0)),
            scratch_shapes=[pltpu.VMEM((1, 1), jnp.float32)],
        ),
        compiler_params=pltpu.CompilerParams(
            # Row axis carries the running accumulator -> reduction axis.
            dimension_semantics=("arbitrary",),
            vmem_limit_bytes=32 * 1024 * 1024,
        ),
        cost_estimate=cost,
    )(logits, labels, diff)
    return out[0, 0]


def _reference_loss(logits, labels, label_emb, hier_relation, hier_weight):
    """Pure-JAX reference mirroring the PyTorch forward."""
    x, y = logits.astype(jnp.float32), labels.astype(jnp.float32)
    bce = jnp.maximum(x, 0.0) - x * y + jnp.log1p(jnp.exp(-jnp.abs(x)))
    loss = jnp.mean(bce)
    rec = 0.0
    for p_idx, children in hier_relation.items():
        if len(children) == 0:
            continue
        ch = label_emb[jnp.asarray(children, dtype=jnp.int32)]
        pe = jnp.broadcast_to(label_emb[p_idx][None, :], ch.shape)
        rec = rec + jnp.sum((pe - ch) ** 2)
    return loss + hier_weight * rec


if __name__ == "__main__":
    key = jax.random.PRNGKey(0)
    k1, k2, k3, k4, k5, k6 = jax.random.split(key, 6)

    hier_weight = 0.1

    # --- Test 1: small shapes typical of the module (single row tile) ---
    batch, num_labels, emb_dim = 4, 12, 32
    hier_relation = {0: [3, 4, 5], 1: [6, 7], 2: [8, 9, 10, 11], 3: []}

    logits = jax.random.normal(k1, (batch, num_labels), dtype=jnp.float32)
    labels = (jax.random.uniform(k2, (batch, num_labels)) > 0.5).astype(jnp.float32)
    label_emb = jax.random.normal(k3, (num_labels, emb_dim), dtype=jnp.float32)

    loss = jax.block_until_ready(
        hierarchy_loss(logits, labels, label_emb, hier_relation, hier_weight))
    ref = _reference_loss(logits, labels, label_emb, hier_relation, hier_weight)
    assert jnp.allclose(loss, ref, rtol=1e-4, atol=1e-4), (loss, ref)

    # --- Test 2: multi-tile grid with a partial (masked) last row tile ---
    batch2, num_labels2 = 20, 128
    hier_relation2 = {0: [1, 2, 3], 5: [6, 7], 10: list(range(11, 20)), 4: []}

    logits2 = jax.random.normal(k4, (batch2, num_labels2), dtype=jnp.float32)
    labels2 = (jax.random.uniform(k5, (batch2, num_labels2)) > 0.5).astype(jnp.float32)
    label_emb2 = jax.random.normal(k6, (num_labels2, emb_dim), dtype=jnp.float32)

    loss2 = jax.block_until_ready(
        hierarchy_loss(logits2, labels2, label_emb2, hier_relation2, hier_weight,
                       row_tile=8))   # grid=(3,), last tile partial -> masked
    ref2 = _reference_loss(logits2, labels2, label_emb2, hier_relation2, hier_weight)
    assert jnp.allclose(loss2, ref2, rtol=1e-4, atol=1e-4), (loss2, ref2)

    print("KERNEL_OK")
</pallas_src>

<mosaic_0001>
module attributes {stable_mosaic.version = 11 : i64} {
  func.func @kernel(%arg0: i32, %arg1: memref<4x12xf32, #tpu.memory_space<vmem>>, %arg2: memref<4x12xf32, #tpu.memory_space<vmem>>, %arg3: memref<9x32xf32, #tpu.memory_space<vmem>>, %arg4: memref<1x1xf32, #tpu.memory_space<vmem>>, %arg5: memref<1x1xf32, #tpu.memory_space<vmem>>) attributes {dimension_semantics = [#tpu.dimension_semantics<arbitrary>], iteration_bounds = array<i64: 1>, scalar_prefetch = 0 : i64, scratch_operands = 1 : i64, tpu.core_type = #tpu.core_type<tc>, window_params = [{transform_indices = @transform_0, window_bounds = array<i64: 4, 12>}, {transform_indices = @transform_1, window_bounds = array<i64: 4, 12>}, {pipeline_mode = #tpu.pipeline_mode<synchronous>, transform_indices = @transform_2, window_bounds = array<i64: 9, 32>}, {pipeline_mode = #tpu.pipeline_mode<synchronous>, transform_indices = @transform_3, window_bounds = array<i64: 1, 1>}]} {
    %c0_i32 = arith.constant 0 : i32
    %0 = arith.cmpi eq, %arg0, %c0_i32 : i32
    %1 = arith.extui %0 : i1 to i32
    %c0_i32_0 = arith.constant 0 : i32
    %2 = arith.cmpi ne, %1, %c0_i32_0 : i32
    scf.if %2 {
      %cst_12 = arith.constant 0.000000e+00 : f32
      %26 = vector.broadcast %cst_12 : f32 to vector<1x1xf32>
      %c0_13 = arith.constant 0 : index
      %c0_14 = arith.constant 0 : index
      %27 = vector.load %arg5[%c0_13, %c0_14] : memref<1x1xf32, #tpu.memory_space<vmem>>, vector<1x1xf32>
      tpu.vector_store %arg5[%c0_13, %c0_14], %26 {strides = array<i32>} : memref<1x1xf32, #tpu.memory_space<vmem>>, vector<1x1xf32>,
    } else {
    }
    %c0 = arith.constant 0 : index
    %c0_1 = arith.constant 0 : index
    %3 = vector.load %arg1[%c0, %c0_1] : memref<4x12xf32, #tpu.memory_space<vmem>>, vector<4x12xf32>
    %c0_2 = arith.constant 0 : index
    %c0_3 = arith.constant 0 : index
    %4 = vector.load %arg2[%c0_2, %c0_3] : memref<4x12xf32, #tpu.memory_space<vmem>>, vector<4x12xf32>
    %cst = arith.constant 0.000000e+00 : f32
    %5 = vector.broadcast %cst : f32 to vector<4x12xf32>
    %6 = arith.maximumf %3, %5 : vector<4x12xf32>
    %7 = arith.mulf %3, %4 : vector<4x12xf32>
    %8 = arith.subf %6, %7 : vector<4x12xf32>
    %9 = math.absf %3 : vector<4x12xf32>
    %cst_4 = arith.constant 0.000000e+00 : f32
    %10 = vector.broadcast %cst_4 : f32 to vector<4x12xf32>
    %11 = arith.subf %10, %9 : vector<4x12xf32>
    %12 = math.exp %11 : vector<4x12xf32>
    %13 = math.log1p %12 : vector<4x12xf32>
    %14 = arith.addf %8, %13 : vector<4x12xf32>
    %c0_5 = arith.constant 0 : index
    %c0_6 = arith.constant 0 : index
    %15 = vector.load %arg5[%c0_5, %c0_6] : memref<1x1xf32, #tpu.memory_space<vmem>>, vector<1x1xf32>
    %16 = vector.shape_cast %14 : vector<4x12xf32> to vector<1x4x12xf32>
    %cst_7 = arith.constant dense<0.000000e+00> : vector<1xf32>
    %17 = vector.multi_reduction <add>, %16, %cst_7 [1, 2] : vector<1x4x12xf32> to vector<1xf32>
    %18 = vector.shape_cast %17 : vector<1xf32> to vector<1x1x1xf32>
    %19 = vector.extract %18[0, 0, 0] : f32 from vector<1x1x1xf32>
    %20 = vector.broadcast %19 : f32 to vector<1x1xf32>
    %21 = arith.addf %15, %20 : vector<1x1xf32>
    %c0_8 = arith.constant 0 : index
    %c0_9 = arith.constant 0 : index
    %22 = vector.load %arg5[%c0_8, %c0_9] : memref<1x1xf32, #tpu.memory_space<vmem>>, vector<1x1xf32>
    tpu.vector_store %arg5[%c0_8, %c0_9], %21 {strides = array<i32>} : memref<1x1xf32, #tpu.memory_space<vmem>>, vector<1x1xf32>,
    %c0_i32_10 = arith.constant 0 : i32
    %23 = arith.cmpi eq, %arg0, %c0_i32_10 : i32
    %24 = arith.extui %23 : i1 to i32
    %c0_i32_11 = arith.constant 0 : i32
    %25 = arith.cmpi ne, %24, %c0_i32_11 : i32
    scf.if %25 {
      %c0_12 = arith.constant 0 : index
      %c0_13 = arith.constant 0 : index
      %26 = vector.load %arg3[%c0_12, %c0_13] : memref<9x32xf32, #tpu.memory_space<vmem>>, vector<9x32xf32>
      %27 = arith.mulf %26, %26 : vector<9x32xf32>
      %28 = vector.shape_cast %27 : vector<9x32xf32> to vector<1x9x32xf32>
      %cst_14 = arith.constant dense<0.000000e+00> : vector<1xf32>
      %29 = vector.multi_reduction <add>, %28, %cst_14 [1, 2] : vector<1x9x32xf32> to vector<1xf32>
      %30 = vector.shape_cast %29 : vector<1xf32> to vector<1x1x1xf32>
      %31 = vector.extract %30[0, 0, 0] : f32 from vector<1x1x1xf32>
      %32 = vector.broadcast %31 : f32 to vector<1x1xf32>
      %c0_15 = arith.constant 0 : index
      %c0_16 = arith.constant 0 : index
      %33 = vector.load %arg5[%c0_15, %c0_16] : memref<1x1xf32, #tpu.memory_space<vmem>>, vector<1x1xf32>
      %cst_17 = arith.constant 0.020833334 : f32
      %34 = vector.broadcast %cst_17 : f32 to vector<1x1xf32>
      %35 = arith.mulf %33, %34 : vector<1x1xf32>
      %cst_18 = arith.constant 1.000000e-01 : f32
      %36 = vector.broadcast %cst_18 : f32 to vector<1x1xf32>
      %37 = arith.mulf %36, %32 : vector<1x1xf32>
      %38 = arith.addf %35, %37 : vector<1x1xf32>
      %c0_19 = arith.constant 0 : index
      %c0_20 = arith.constant 0 : index
      %39 = vector.load %arg4[%c0_19, %c0_20] : memref<1x1xf32, #tpu.memory_space<vmem>>, vector<1x1xf32>
      tpu.vector_store %arg4[%c0_19, %c0_20], %38 {strides = array<i32>} : memref<1x1xf32, #tpu.memory_space<vmem>>, vector<1x1xf32>,
    } else {
    }
    return
  }
  func.func @transform_0(%arg0: i32) -> (i32, i32) {
    %c0_i32 = arith.constant 0 : i32
    %c0_i32_0 = arith.constant 0 : i32
    return %arg0, %c0_i32 : i32, i32
  }
  func.func @transform_1(%arg0: i32) -> (i32, i32) {
    %c0_i32 = arith.constant 0 : i32
    %c0_i32_0 = arith.constant 0 : i32
    return %arg0, %c0_i32 : i32, i32
  }
  func.func @transform_2(%arg0: i32) -> (i32, i32) {
    %c0_i32 = arith.constant 0 : i32
    %c0_i32_0 = arith.constant 0 : i32
    %c0_i32_1 = arith.constant 0 : i32
    return %c0_i32, %c0_i32_0 : i32, i32
  }
  func.func @transform_3(%arg0: i32) -> (i32, i32) {
    %c0_i32 = arith.constant 0 : i32
    %c0_i32_0 = arith.constant 0 : i32
    %c0_i32_1 = arith.constant 0 : i32
    return %c0_i32, %c0_i32_0 : i32, i32
  }
}

</mosaic_0001>

<bundles_post_ra>
// kernel: tpu_custom_call.1
= control target key start
LH: loop header
LB: loop body
LE: loop exit
PB: predicated region body
PF: predicated region fallthrough
CT: control target
= control target key end

     0   :  { %8 = vsyncpa [#allocation4], 0  ;;  %s279_s0 = inlined_call_operand.hbm [shape: f32[4,12], index: 0, kind: input, shape index: {}]   ;;  %s280_s1 = inlined_call_operand.hbm [shape: f32[4,12], index: 1, kind: input, shape index: {}]   ;;  %s281_s2 = inlined_call_operand.hbm [shape: f32[9,32], index: 2, kind: input, shape index: {}]   ;;  %s282_s3 = inlined_call_operand.hbm [shape: f32[1,1], index: 3, kind: output, shape index: {}]  }
   0x1   :  { %9 = vsyncpa [#allocation7], 0 }
   0x2   :  { %10 = vsyncpa [#allocation5], 0  ;;  %s237_s12 = smov [#allocation6]   ;;  %s238_s14 = smov [#allocation3]  }
   0x3   :  { %s27_s13 = sshll.u32 %s237_s12, 4  ;;  %s17_s15 = sshll.u32 %s238_s14, 4  ;;  %s28_s13 = int_to_ptr.vmem [resolvable:$true] %s27_s13  ;;  %s18_s15 = int_to_ptr.vmem [resolvable:$true] %s17_s15 }
   0x4   :  { %s159_s16 = scalar_lea.vmem %s28_s13, 64  ;;  %p164_p1 = scmp.lt.s32.totalorder %s28_s13, %s28_s13 }
   0x5   :  { %p160_p0 = scmp.ne.s32.totalorder %s28_s13, %s159_s16  ;;  %p165_p2 = scmp.lt.s32.totalorder %s159_s16, %s159_s16 }
   0x7   :  { %p166_p3 = por %p165_p2, %p164_p1 }
   0x9   :  { %p167_p4 = pnand %p166_p3, %p160_p0 }
   0xb   :  { %170 = shalt.err (!%p167_p4)
}
   0xc   :  { %30 = dma.hbm_to_vmem [thread:$0]  %s280_s1, 64, %s28_s13, [#allocation7]  }
   0xd   :  { %s179_s19 = scalar_lea.vmem %s18_s15, 64  ;;  %p184_p6 = scmp.lt.s32.totalorder %s18_s15, %s18_s15 }
   0xe   :  { %p180_p5 = scmp.ne.s32.totalorder %s18_s15, %s179_s19  ;;  %p185_p7 = scmp.lt.s32.totalorder %s179_s19, %s179_s19 }
  0x10   :  { %p186_p8 = por %p185_p7, %p184_p6 }
  0x12   :  { %p187_p9 = pnand %p186_p8, %p180_p5 }
  0x14   :  { %190 = shalt.err (!%p187_p9)
}
  0x15   :  { %20 = dma.hbm_to_vmem [thread:$0]  %s279_s0, 64, %s18_s15, [#allocation4]  }
  0x16   :  { %s239_s22 = smov [#allocation8]  }
  0x17   :  { %s36_s23 = sshll.u32 %s239_s22, 4  ;;  %s37_s23 = int_to_ptr.vmem [resolvable:$true] %s36_s23 }
  0x18   :  { %s199_s24 = scalar_lea.vmem %s37_s23, 256  ;;  %p204_p11 = scmp.lt.s32.totalorder %s37_s23, %s37_s23 }
  0x19   :  { %p200_p10 = scmp.ne.s32.totalorder %s37_s23, %s199_s24  ;;  %p205_p12 = scmp.lt.s32.totalorder %s199_s24, %s199_s24 }
  0x1b   :  { %p206_p13 = por %p205_p12, %p204_p11 }
  0x1d   :  { %p207_p0 = pnand %p206_p13, %p200_p10 }
  0x1f   :  { %210 = shalt.err (!%p207_p0)
}
  0x20   :  { %s240_s1 = smov 128   ;;  %s241_s25 = smov 8  }
  0x21   :  { %42 = dma.hbm_to_vmem [thread:$0]  %s281_s2, 256, %s37_s23, [#allocation7], %s240_s1, %s240_s1, %s241_s25  }
  0x22   :  { %231 = dma.done.wait [#allocation4], 64  }
  0x23   :  { %232 = vsyncadd [#allocation4], 4294967232 }
  0x24   :  { %233 = dma.done.wait [#allocation7], 320  }
  0x25   :  { %234 = vsyncadd [#allocation7], 4294966976  ;;  %v58_v0 = vld [vmem:[#allocation3] sm:$0xf]  ;;  %v59_v7 = vld [vmem:[#allocation6] sm:$0xf] }
  0x26   :  { %v63_v1 = vand.u32 2147483647, %v58_v0  ;;  %v60_v9 = vmax.f32 %v58_v0, 0.0  ;;  %v61_v10 = vmul.f32 %v59_v7, %v58_v0  ;;  %v96_v12 = vld [vmem:[#allocation8] sm:$0xff]  ;;  %v97_v13 = vld [vmem:[#allocation8 + $0x8] sm:$0x1] }
  0x27   :  { %v98_v17 = vmul.f32 %v96_v12, %v96_v12  ;;  %v99_v18 = vmul.f32 %v97_v13, %v97_v13  ;;  %vm100_vm1 = vcmask 261120   ;;  %vm102_vm2 = vcmask 253952   ;;  %s243_s28 = smov [#allocation9]  }
  0x28   :  { %v64_v2 = vsub.f32 0.0, %v63_v1  ;;  %v62_v16 = vsub.f32 %v60_v9, %v61_v10  ;;  %vm78_vm3 = vcmask 93184   ;;  %vm56_vm4 = vcmask 0   ;;  %s126_s29 = sshll.u32 %s243_s28, 4  ;;  %s127_s29 = int_to_ptr.vmem [resolvable:$true] %s126_s29 }
  0x29   :  { %v101_v22 = vsel %vm100_vm1, %v98_v17, 0.0  ;;  %v103_v23 = vsel %vm102_vm2, %v99_v18, 0.0  ;;  %v242_v26 = vmov 0.0   ;;  %s211_s30 = scalar_lea.vmem %s127_s29, 16  ;;  %s215_s4 = scalar_lea.vmem %s127_s29, 32 }
  0x2a   :  { %v65_v3 = vmul.f32 1.442695, %v64_v2  ;;  %v104_v25 = vadd.f32 %v103_v23, %v101_v22  ;;  %57 = vst.msk [vmem:[#allocation2] sm:$0x1] %vm56_vm4, %v242_v26  ;;  %p212_p1 = scmp.ne.s32.totalorder %s127_s29, %s211_s30  ;;  %p216_p2 = scmp.lt.s32.totalorder %s127_s29, %s127_s29 }
  0x2b   :  { %p217_p3 = scmp.lt.s32.totalorder %s215_s4, %s211_s30 }
  0x2c   :  { %147 = vpow2.f32 %v65_v3 }
  0x2d   :  { %p218_p4 = por %p217_p3, %p216_p2 }
  0x2f   :  { %p219_p5 = pnand %p218_p4, %p212_p1 }
  0x31   :  { %v77_v41 = vld [vmem:[#allocation2] sm:$0x1] }
  0x39   :  { %v148_v4 = vpop.eup %147 }
  0x3a   :  { %v67_v5 = vadd.f32 1.0, %v148_v4  ;;  %v70_v6 = vmul.f32 -0.5, %v148_v4  ;;  %v73_v11 = vand.u32 2147483647, %v148_v4 }
  0x3c   :  { %149 = vlog2.f32 %v67_v5  ;;  %v71_v8 = vadd.f32 1.0, %v70_v6  ;;  %vm74_vm0 = vcmp.lt.f32.partialorder %v73_v11, 0.0004427343 }
  0x3e   :  { %v72_v14 = vmul.f32 %v148_v4, %v71_v8 }
  0x49   :  { %v150_v15 = vpop.eup %149 }
  0x4a   :  { %v69_v19 = vmul.f32 0.6931472, %v150_v15 }
  0x4c   :  { %v75_v20 = vsel %vm74_vm0, %v72_v14, %v69_v19 }
  0x4d   :  { %v76_v21 = vadd.f32 %v75_v20, %v62_v16 }
  0x4f   :  { %v79_v24 = vsel %vm78_vm3, %v76_v21, 0.0 }
  0x50   :  { %80 = vadd.xlane.f32.xlu0 %v79_v24 }
  0x54   :  { %105 = vadd.xlane.f32.xlu0 %v104_v25 }
  0xd9   :  { %v81_v27 = vpop.xlane.xlu0 %80 }
  0xda   :  { %v82_v28 = vrot.slane %v81_v27, 4 }
  0xdc   :  { %v83_v29 = vadd.f32 %v82_v28, %v81_v27 }
  0xdd   :  { %v106_v30 = vpop.xlane.xlu0 %105 }
  0xde   :  { %v84_v31 = vrot.slane %v83_v29, 2  ;;  %v107_v32 = vrot.slane %v106_v30, 4 }
  0xe0   :  { %v108_v33 = vadd.f32 %v107_v32, %v106_v30  ;;  %v85_v34 = vadd.f32 %v84_v31, %v83_v29 }
  0xe2   :  { %v109_v35 = vrot.slane %v108_v33, 2  ;;  %v86_v36 = vrot.slane %v85_v34, 1 }
  0xe4   :  { %v110_v37 = vadd.f32 %v109_v35, %v108_v33  ;;  %v87_v38 = vadd.f32 %v86_v36, %v85_v34 }
  0xe6   :  { %136 = vpush %v87_v38  ;;  %v111_v39 = vrot.slane %v110_v37, 1 }
  0xe8   :  { %v112_v40 = vadd.f32 %v111_v39, %v110_v37 }
  0xea   :  { %138 = vpush %v112_v40 }
 0x117   :  { %s137_s0 = spop %136 }
 0x118   :  { %v89_v42 = vstv %s137_s0 }
 0x119   :  { %v90_v43 = vadd.f32 %v89_v42, %v77_v41 }
 0x11b   :  { %92 = vst.msk [vmem:[#allocation2] sm:$0x1] %vm56_vm4, %v90_v43  ;;  %s139_s2 = spop %138 }
 0x11c   :  { %v114_v44 = vstv %s139_s2 }
 0x11d   :  { %v117_v47 = vmul.f32 0.1, %v114_v44 }
 0x122   :  { %v115_v45 = vld [vmem:[#allocation2] sm:$0x1] }
 0x123   :  { %v116_v46 = vmul.f32 0.020833334, %v115_v45 }
 0x125   :  { %v118_v48 = vadd.f32 %v117_v47, %v116_v46 }
 0x127   :  { %119 = vst.msk [vmem:[#allocation9] sm:$0x1] %vm56_vm4, %v118_v48 }
 0x128   :  { %222 = shalt.err (!%p219_p5)
}
 0x129   :  { %129 = dma.vmem_to_hbm [thread:$0]  %s127_s29, 16, %s282_s3, [#allocation5]  }
 0x12a   :  { %235 = dma.done.wait [#allocation5], 16  }
 0x12b   :  { %236 = vsyncadd [#allocation5], 4294967280 }
 0x12c   :  { %133 = vsyncpa [#allocation4], 1 }
 0x12d   :  { %134 = vsyncpa [#allocation7], 1 }
 0x12e   :  { %135 = vsyncpa [#allocation5], 1 }

</bundles_post_ra>
